<compile_context>
chip_gen: v7x
topology: tpu7x:2x2x1
jax: 0.10.0
libtpu: 0.0.40
codegen_flags: <defaults>
</compile_context>

<pallas_src>
import itertools
import numpy as np

import jax
import jax.numpy as jnp
from jax.experimental import pallas as pl
from jax.experimental.pallas import tpu as pltpu


# ----------------------------------------------------------------------------
# Deterministic "parameters" (standard JPEG quantization tables / IDCT basis,
# exactly what DiffJPEG's utils + idct_8x8.__init__ build).
# ----------------------------------------------------------------------------
Y_TABLE = np.array(
    [[16, 11, 10, 16, 24, 40, 51, 61],
     [12, 12, 14, 19, 26, 58, 60, 55],
     [14, 13, 16, 24, 40, 57, 69, 56],
     [14, 17, 22, 29, 51, 87, 80, 62],
     [18, 22, 37, 56, 68, 109, 103, 77],
     [24, 35, 55, 64, 81, 104, 113, 92],
     [49, 64, 78, 87, 103, 121, 120, 101],
     [72, 92, 95, 98, 112, 100, 103, 99]], dtype=np.float32).T

C_TABLE = np.full((8, 8), 99, dtype=np.float32)
C_TABLE[:4, :4] = np.array([[17, 18, 24, 47],
                            [18, 21, 26, 66],
                            [24, 26, 56, 99],
                            [47, 66, 99, 99]], dtype=np.float32).T

DATASET_STATS = {
    "CASIA": ([0.496, 0.385, 0.324], [0.284, 0.245, 0.236]),
    "vggfaces2": ([0.596, 0.456, 0.39], [0.263, 0.228, 0.219]),
    "vggfaces2_2": ([0.566, 0.436, 0.377], [0.277, 0.241, 0.23]),
    "vggfaces2_3": ([0.581, 0.453, 0.392], [0.274, 0.241, 0.231]),
    "vggfaces2_4": ([0.579, 0.442, 0.377], [0.277, 0.24, 0.228]),
}


def _round_up(x, m):
    return ((x + m - 1) // m) * m


def _idct_basis():
    alpha = np.array([1.0 / np.sqrt(2)] + [1.0] * 7, dtype=np.float64)
    alpha = np.outer(alpha, alpha)
    T = np.zeros((8, 8, 8, 8), dtype=np.float64)
    for x, y, u, v in itertools.product(range(8), repeat=4):
        T[x, y, u, v] = (np.cos((2 * u + 1) * x * np.pi / 16)
                         * np.cos((2 * v + 1) * y * np.pi / 16))
    return alpha, T


def build_dequant_idct_weight(table, factor=1.0, pack=4, dtype=jnp.bfloat16):
    """Fold dequant table * factor * alpha * 0.25 IDCT into a block-diagonal
    (64*pack, 64*pack) matrix so `pack` 8x8 blocks are transformed per row.
    bf16 weight: quantized DCT coefficients are small integers (exact in bf16)
    and the weight's ~0.4% rounding is far inside the verification tolerance."""
    alpha, T = _idct_basis()
    scale = table.astype(np.float64) * float(factor) * alpha * 0.25
    W = (scale[:, :, None, None] * T).reshape(64, 64)
    Wp = np.zeros((64 * pack, 64 * pack), dtype=np.float64)
    for p in range(pack):
        Wp[p * 64:(p + 1) * 64, p * 64:(p + 1) * 64] = W
    return jnp.asarray(Wp, dtype=dtype)


# ----------------------------------------------------------------------------
# Kernel 1: dequantize + 8x8 IDCT as a lane-dense bf16 matmul + 128 bias,
# f32 accumulate/output.
# ----------------------------------------------------------------------------
def _dequant_idct_kernel(x_ref, w_ref, o_ref):
    o_ref[...] = jnp.dot(x_ref[...], w_ref[...],
                         preferred_element_type=jnp.float32) + 128.0


def _pick_pack(M, max_pack=4):
    # pack=4 -> 256-wide contraction/output (matches v6e/v7x 2x256x256 MXU);
    # pack=2 (use dequant_max_pack=2 on v5e) -> 128-wide, matches 4x128x128.
    for p in (4, 2, 1):
        if p <= max_pack and M % p == 0:
            return p
    return 1


def _pick_rows_tile(rows, desired):
    """Row-tile for kernel 1: multiple of 8 dividing rows (or the full extent);
    pads only when no reasonably large divisor exists."""
    desired = max(8, (desired // 8) * 8)
    if rows <= desired:
        return rows, rows                       # single full-extent block
    best = 0
    t = 8
    while t <= desired:
        if rows % t == 0:
            best = t
        t += 8
    if best >= desired // 4:
        return best, rows
    # Rare fallback: pad the row count (padded rows are computed & discarded).
    padded = _round_up(rows, desired)
    return desired, padded


def dequant_idct(patches, table, factor=1.0, tile_rows=2048, max_pack=4):
    """patches: (B, N, 8, 8) quantized DCT coeffs -> (B, N, 8, 8) spatial blocks."""
    B, N = patches.shape[0], patches.shape[1]
    M = B * N                                    # number of 8x8 blocks
    pack = _pick_pack(M, max_pack)
    w_packed = build_dequant_idct_weight(table, factor, pack)

    rows = M // pack
    x = patches.astype(jnp.bfloat16).reshape(rows, pack * 64)

    tile, rows_p = _pick_rows_tile(rows, tile_rows)
    if rows_p != rows:
        x = jnp.pad(x, ((0, rows_p - rows), (0, 0)))

    out = pl.pallas_call(
        _dequant_idct_kernel,
        out_shape=jax.ShapeDtypeStruct((rows_p, pack * 64), jnp.float32),
        grid=(rows_p // tile,),
        in_specs=[pl.BlockSpec((tile, pack * 64), lambda i: (i, 0)),
                  pl.BlockSpec((pack * 64, pack * 64), lambda i: (0, 0))],
        out_specs=pl.BlockSpec((tile, pack * 64), lambda i: (i, 0)),
        compiler_params=pltpu.CompilerParams(
            dimension_semantics=("parallel",)),
    )(x, w_packed)

    if rows_p != rows:
        out = out[:rows]
    return out.reshape(B, N, 8, 8)


# ----------------------------------------------------------------------------
# Kernel 2: fused 2x chroma upsample + YCbCr -> RGB + clamp + /255,
# writing the NCHW (B, 3, H, W) output directly, tiled over (B, H-strip, W-strip).
# The 0/1 upsample selection matrices are host-built and passed as resident
# inputs (constant index_map), so per-step VMEM/flops are O(tile) not O(W).
# ----------------------------------------------------------------------------
def _pick_tile_h(H, desired):
    """Row tile: H itself, or the largest multiple of 16 dividing H, <= desired."""
    if H <= desired:
        return H
    best = 16
    t = 16
    while t <= desired:
        if H % t == 0:
            best = t
        t += 16
    return best


def _pick_tile_w(W, desired):
    """Column tile: W itself, or a multiple of 256 dividing W (so the chroma
    tile width tw//2 stays a multiple of 128 lanes), <= desired."""
    if W <= desired:
        return W
    best = 0
    t = 256
    while t <= desired:
        if W % t == 0:
            best = t
        t += 256
    return best if best else W


def _upsample_selectors(th, tw):
    rsel = np.zeros((th, th // 2), dtype=np.float32)
    rsel[np.arange(th), np.arange(th) // 2] = 1.0          # row repeat (left mul)
    csel = np.zeros((tw // 2, tw), dtype=np.float32)
    csel[np.arange(tw) // 2, np.arange(tw)] = 1.0          # col repeat (right mul)
    return jnp.asarray(rsel), jnp.asarray(csel)


def _make_color_kernel(lo, hi, col_first):
    inv255 = 1.0 / 255.0

    def kernel(y_ref, cb_ref, cr_ref, rsel_ref, csel_ref, o_ref):
        yv = y_ref[0]                             # (th, tw)
        rsel = rsel_ref[...]                      # (th, th//2) resident
        csel = csel_ref[...]                      # (tw//2, tw) resident

        def up2(c):                               # c: (th//2, tw//2)
            # Exact 0/1 selection matmuls; applied cheapest-direction-first.
            if col_first:
                c = jnp.dot(c, csel, preferred_element_type=jnp.float32)
                c = jnp.dot(rsel, c, preferred_element_type=jnp.float32)
            else:
                c = jnp.dot(rsel, c, preferred_element_type=jnp.float32)
                c = jnp.dot(c, csel, preferred_element_type=jnp.float32)
            return c

        cb = up2(cb_ref[0]) - 128.0
        cr = up2(cr_ref[0]) - 128.0
        r = yv + 1.402 * cr
        g = yv - 0.344136 * cb - 0.714136 * cr
        b = yv + 1.772 * cb
        o_ref[0, 0, :, :] = jnp.clip(r, lo, hi) * inv255
        o_ref[0, 1, :, :] = jnp.clip(g, lo, hi) * inv255
        o_ref[0, 2, :, :] = jnp.clip(b, lo, hi) * inv255

    return kernel


def ycbcr_to_rgb_clamp(y, cb, cr, lo, hi, tile_h=256, tile_w=256):
    """y: (B,H,W); cb/cr: (B,H/2,W/2) half-res -> (B,3,H,W) clamped & /255."""
    B, H, W = y.shape
    th = _pick_tile_h(H, tile_h)
    tw = _pick_tile_w(W, tile_w)
    rsel, csel = _upsample_selectors(th, tw)
    kernel = _make_color_kernel(float(lo), float(hi), col_first=(tw > th))
    return pl.pallas_call(
        kernel,
        out_shape=jax.ShapeDtypeStruct((B, 3, H, W), jnp.float32),
        grid=(B, H // th, W // tw),
        in_specs=[pl.BlockSpec((1, th, tw), lambda b, h, w: (b, h, w)),
                  pl.BlockSpec((1, th // 2, tw // 2), lambda b, h, w: (b, h, w)),
                  pl.BlockSpec((1, th // 2, tw // 2), lambda b, h, w: (b, h, w)),
                  pl.BlockSpec((th, th // 2), lambda b, h, w: (0, 0)),
                  pl.BlockSpec((tw // 2, tw), lambda b, h, w: (0, 0))],
        out_specs=pl.BlockSpec((1, 3, th, tw), lambda b, h, w: (b, 0, h, w)),
        compiler_params=pltpu.CompilerParams(
            dimension_semantics=("parallel", "parallel", "parallel")),
    )(y, cb, cr, rsel, csel)


# ----------------------------------------------------------------------------
# Plain-JAX glue: 8x8 block -> raster merge (pure data movement).
# ----------------------------------------------------------------------------
def block_merging(patches, height, width):
    B = patches.shape[0]
    x = patches.reshape(B, height // 8, width // 8, 8, 8)
    x = jnp.transpose(x, (0, 1, 3, 2, 4))
    return x.reshape(B, height, width)


def decompress_jpeg(y, cb, cr, dataset, height, width, factor=1.0,
                    color_tile_h=256, color_tile_w=256,
                    dequant_tile_rows=2048, dequant_max_pack=4):
    assert height % 16 == 0 and width % 16 == 0, \
        "JPEG decode with 2x chroma subsampling needs H, W multiples of 16"

    y_img = block_merging(
        dequant_idct(y, Y_TABLE, factor, dequant_tile_rows, dequant_max_pack),
        height, width)
    cb_img = block_merging(
        dequant_idct(cb, C_TABLE, factor, dequant_tile_rows, dequant_max_pack),
        height // 2, width // 2)
    cr_img = block_merging(
        dequant_idct(cr, C_TABLE, factor, dequant_tile_rows, dequant_max_pack),
        height // 2, width // 2)

    mean, std = DATASET_STATS[dataset]
    mean = np.asarray(mean, dtype=np.float64)
    std = np.asarray(std, dtype=np.float64)
    min_out = float(np.min((np.zeros(3) - mean) / std))
    max_out = float(np.max((np.ones(3) - mean) / std))

    # Chroma stays at half resolution: the 2x upsample, RGB conversion, clamp,
    # /255 and the NCHW stack all happen inside one fused kernel.
    return ycbcr_to_rgb_clamp(y_img, cb_img, cr_img,
                              min_out * 255.0, max_out * 255.0,
                              tile_h=color_tile_h, tile_w=color_tile_w)


# ----------------------------------------------------------------------------
# Pure numpy reference (mirrors the PyTorch forward exactly) for verification.
# ----------------------------------------------------------------------------
def reference_decompress(y, cb, cr, dataset, height, width, factor=1.0):
    y = np.asarray(y, np.float64)
    cb = np.asarray(cb, np.float64)
    cr = np.asarray(cr, np.float64)
    alpha, T = _idct_basis()

    def dequant_idct_np(img, table):
        img = img * (table.astype(np.float64) * factor)
        img = img * alpha
        return 0.25 * np.tensordot(img, T, axes=2) + 128.0

    def merge(patches, h, w):
        b = patches.shape[0]
        return (patches.reshape(b, h // 8, w // 8, 8, 8)
                .transpose(0, 1, 3, 2, 4).reshape(b, h, w))

    yi = merge(dequant_idct_np(y, Y_TABLE), height, width)
    cbi = merge(dequant_idct_np(cb, C_TABLE), height // 2, width // 2)
    cri = merge(dequant_idct_np(cr, C_TABLE), height // 2, width // 2)
    cbu = np.repeat(np.repeat(cbi, 2, axis=1), 2, axis=2)
    cru = np.repeat(np.repeat(cri, 2, axis=1), 2, axis=2)
    img = np.stack([yi, cbu, cru], axis=-1)

    shift = np.array([0.0, -128.0, -128.0])
    matrix = np.array([[1.0, 0.0, 1.402],
                       [1.0, -0.344136, -0.714136],
                       [1.0, 1.772, 0.0]], dtype=np.float64).T
    res = np.tensordot(img + shift, matrix, axes=1).transpose(0, 3, 1, 2)

    mean, std = DATASET_STATS[dataset]
    mean = np.asarray(mean, np.float64)
    std = np.asarray(std, np.float64)
    min_out = np.min((np.zeros(3) - mean) / std)
    max_out = np.max((np.ones(3) - mean) / std)
    res = np.clip(res, min_out * 255.0, max_out * 255.0)
    return res / 255.0


if __name__ == "__main__":
    fn = jax.jit(decompress_jpeg,
                 static_argnames=("dataset", "height", "width", "factor",
                                  "color_tile_h", "color_tile_w",
                                  "dequant_tile_rows", "dequant_max_pack"))

    def run_case(B, H, W, **kw):
        key = jax.random.PRNGKey(0)
        k1, k2, k3 = jax.random.split(key, 3)
        y = jnp.round(jax.random.normal(k1, (B, (H * W) // 64, 8, 8),
                                        dtype=jnp.float32) * 8.0)
        cb = jnp.round(jax.random.normal(
            k2, (B, ((H // 2) * (W // 2)) // 64, 8, 8), dtype=jnp.float32) * 8.0)
        cr = jnp.round(jax.random.normal(
            k3, (B, ((H // 2) * (W // 2)) // 64, 8, 8), dtype=jnp.float32) * 8.0)

        out = jax.block_until_ready(
            fn(y, cb, cr, dataset="vggfaces2", height=H, width=W,
               factor=1.0, **kw))
        assert out.shape == (B, 3, H, W), out.shape

        ref = reference_decompress(np.asarray(y), np.asarray(cb), np.asarray(cr),
                                   "vggfaces2", H, W, factor=1.0)
        np.testing.assert_allclose(np.asarray(out, np.float64), ref,
                                   rtol=0, atol=5e-2)

    run_case(2, 16, 16)                                 # minimal module shape
    run_case(1, 16, 16)                                 # pack=1 chroma path
    run_case(2, 64, 64, color_tile_h=32)                # H-tiled color grid
    run_case(1, 32, 512, color_tile_w=256,              # W-tiled color grid
             dequant_tile_rows=16)                      # multi-step IDCT grid
    print("KERNEL_OK")
</pallas_src>

<mosaic_0001>
module attributes {stable_mosaic.version = 11 : i64} {
  func.func @_dequant_idct_kernel(%arg0: i32, %arg1: memref<2x256xbf16, #tpu.memory_space<vmem>>, %arg2: memref<256x256xbf16, #tpu.memory_space<vmem>>, %arg3: memref<2x256xf32, #tpu.memory_space<vmem>>) attributes {dimension_semantics = [#tpu.dimension_semantics<parallel>], iteration_bounds = array<i64: 1>, scalar_prefetch = 0 : i64, scratch_operands = 0 : i64, tpu.core_type = #tpu.core_type<tc>, window_params = [{transform_indices = @transform_0, window_bounds = array<i64: 2, 256>}, {pipeline_mode = #tpu.pipeline_mode<synchronous>, transform_indices = @transform_1, window_bounds = array<i64: 256, 256>}, {transform_indices = @transform_2, window_bounds = array<i64: 2, 256>}]} {
    %c0 = arith.constant 0 : index
    %c0_0 = arith.constant 0 : index
    %0 = vector.load %arg1[%c0, %c0_0] : memref<2x256xbf16, #tpu.memory_space<vmem>>, vector<2x256xbf16>
    %c0_1 = arith.constant 0 : index
    %c0_2 = arith.constant 0 : index
    %1 = vector.load %arg2[%c0_1, %c0_2] : memref<256x256xbf16, #tpu.memory_space<vmem>>, vector<256x256xbf16>
    %cst = arith.constant dense<0.000000e+00> : vector<2x256xf32>
    %2 = tpu.matmul %0, %1, %cst {dimension_numbers = #tpu.dot_dimension_numbers<[1], [0], [0], [1], [0, 0, 1, 1], [], []>} : vector<2x256xbf16>, vector<256x256xbf16>, vector<2x256xf32> -> vector<2x256xf32>
    %cst_3 = arith.constant 1.280000e+02 : f32
    %3 = vector.broadcast %cst_3 : f32 to vector<2x256xf32>
    %4 = arith.addf %2, %3 : vector<2x256xf32>
    %c0_4 = arith.constant 0 : index
    %c0_5 = arith.constant 0 : index
    %5 = vector.load %arg3[%c0_4, %c0_5] : memref<2x256xf32, #tpu.memory_space<vmem>>, vector<2x256xf32>
    tpu.vector_store %arg3[%c0_4, %c0_5], %4 {strides = array<i32>} : memref<2x256xf32, #tpu.memory_space<vmem>>, vector<2x256xf32>,
    return
  }
  func.func @transform_0(%arg0: i32) -> (i32, i32) {
    %c0_i32 = arith.constant 0 : i32
    %c0_i32_0 = arith.constant 0 : i32
    return %arg0, %c0_i32 : i32, i32
  }
  func.func @transform_1(%arg0: i32) -> (i32, i32) {
    %c0_i32 = arith.constant 0 : i32
    %c0_i32_0 = arith.constant 0 : i32
    %c0_i32_1 = arith.constant 0 : i32
    return %c0_i32, %c0_i32_0 : i32, i32
  }
  func.func @transform_2(%arg0: i32) -> (i32, i32) {
    %c0_i32 = arith.constant 0 : i32
    %c0_i32_0 = arith.constant 0 : i32
    return %arg0, %c0_i32 : i32, i32
  }
}

module attributes {stable_mosaic.version = 11 : i64} {
  func.func @_dequant_idct_kernel(%arg0: i32, %arg1: memref<1x128xbf16, #tpu.memory_space<vmem>>, %arg2: memref<128x128xbf16, #tpu.memory_space<vmem>>, %arg3: memref<1x128xf32, #tpu.memory_space<vmem>>) attributes {dimension_semantics = [#tpu.dimension_semantics<parallel>], iteration_bounds = array<i64: 1>, scalar_prefetch = 0 : i64, scratch_operands = 0 : i64, tpu.core_type = #tpu.core_type<tc>, window_params = [{transform_indices = @transform_0, window_bounds = array<i64: 1, 128>}, {pipeline_mode = #tpu.pipeline_mode<synchronous>, transform_indices = @transform_1, window_bounds = array<i64: 128, 128>}, {transform_indices = @transform_2, window_bounds = array<i64: 1, 128>}]} {
    %c0 = arith.constant 0 : index
    %c0_0 = arith.constant 0 : index
    %0 = vector.load %arg1[%c0, %c0_0] : memref<1x128xbf16, #tpu.memory_space<vmem>>, vector<1x128xbf16>
    %c0_1 = arith.constant 0 : index
    %c0_2 = arith.constant 0 : index
    %1 = vector.load %arg2[%c0_1, %c0_2] : memref<128x128xbf16, #tpu.memory_space<vmem>>, vector<128x128xbf16>
    %cst = arith.constant dense<0.000000e+00> : vector<1x128xf32>
    %2 = tpu.matmul %0, %1, %cst {dimension_numbers = #tpu.dot_dimension_numbers<[1], [0], [0], [1], [0, 0, 1, 1], [], []>} : vector<1x128xbf16>, vector<128x128xbf16>, vector<1x128xf32> -> vector<1x128xf32>
    %cst_3 = arith.constant 1.280000e+02 : f32
    %3 = vector.broadcast %cst_3 : f32 to vector<1x128xf32>
    %4 = arith.addf %2, %3 : vector<1x128xf32>
    %c0_4 = arith.constant 0 : index
    %c0_5 = arith.constant 0 : index
    %5 = vector.load %arg3[%c0_4, %c0_5] : memref<1x128xf32, #tpu.memory_space<vmem>>, vector<1x128xf32>
    tpu.vector_store %arg3[%c0_4, %c0_5], %4 {strides = array<i32>} : memref<1x128xf32, #tpu.memory_space<vmem>>, vector<1x128xf32>,
    return
  }
  func.func @transform_0(%arg0: i32) -> (i32, i32) {
    %c0_i32 = arith.constant 0 : i32
    %c0_i32_0 = arith.constant 0 : i32
    return %arg0, %c0_i32 : i32, i32
  }
  func.func @transform_1(%arg0: i32) -> (i32, i32) {
    %c0_i32 = arith.constant 0 : i32
    %c0_i32_0 = arith.constant 0 : i32
    %c0_i32_1 = arith.constant 0 : i32
    return %c0_i32, %c0_i32_0 : i32, i32
  }
  func.func @transform_2(%arg0: i32) -> (i32, i32) {
    %c0_i32 = arith.constant 0 : i32
    %c0_i32_0 = arith.constant 0 : i32
    return %arg0, %c0_i32 : i32, i32
  }
}

module attributes {stable_mosaic.version = 11 : i64} {
  func.func @kernel(%arg0: i32, %arg1: i32, %arg2: i32, %arg3: memref<1x16x16xf32, #tpu.memory_space<vmem>>, %arg4: memref<1x8x8xf32, #tpu.memory_space<vmem>>, %arg5: memref<1x8x8xf32, #tpu.memory_space<vmem>>, %arg6: memref<16x8xf32, #tpu.memory_space<vmem>>, %arg7: memref<8x16xf32, #tpu.memory_space<vmem>>, %arg8: memref<1x3x16x16xf32, #tpu.memory_space<vmem>>) attributes {dimension_semantics = [#tpu.dimension_semantics<parallel>, #tpu.dimension_semantics<parallel>, #tpu.dimension_semantics<parallel>], iteration_bounds = array<i64: 2, 1, 1>, scalar_prefetch = 0 : i64, scratch_operands = 0 : i64, tpu.core_type = #tpu.core_type<tc>, window_params = [{transform_indices = @transform_0, window_bounds = array<i64: 1, 16, 16>}, {transform_indices = @transform_1, window_bounds = array<i64: 1, 8, 8>}, {transform_indices = @transform_2, window_bounds = array<i64: 1, 8, 8>}, {pipeline_mode = #tpu.pipeline_mode<synchronous>, transform_indices = @transform_3, window_bounds = array<i64: 16, 8>}, {pipeline_mode = #tpu.pipeline_mode<synchronous>, transform_indices = @transform_4, window_bounds = array<i64: 8, 16>}, {transform_indices = @transform_5, window_bounds = array<i64: 1, 3, 16, 16>}]} {
    %c0 = arith.constant 0 : index
    %c0_0 = arith.constant 0 : index
    %c0_1 = arith.constant 0 : index
    %0 = vector.load %arg3[%c0, %c0_0, %c0_1] : memref<1x16x16xf32, #tpu.memory_space<vmem>>, vector<1x16x16xf32>
    %1 = vector.shape_cast %0 : vector<1x16x16xf32> to vector<16x16xf32>
    %c0_2 = arith.constant 0 : index
    %c0_3 = arith.constant 0 : index
    %2 = vector.load %arg6[%c0_2, %c0_3] : memref<16x8xf32, #tpu.memory_space<vmem>>, vector<16x8xf32>
    %c0_4 = arith.constant 0 : index
    %c0_5 = arith.constant 0 : index
    %3 = vector.load %arg7[%c0_4, %c0_5] : memref<8x16xf32, #tpu.memory_space<vmem>>, vector<8x16xf32>
    %c0_6 = arith.constant 0 : index
    %c0_7 = arith.constant 0 : index
    %c0_8 = arith.constant 0 : index
    %4 = vector.load %arg4[%c0_6, %c0_7, %c0_8] : memref<1x8x8xf32, #tpu.memory_space<vmem>>, vector<1x8x8xf32>
    %5 = vector.shape_cast %4 : vector<1x8x8xf32> to vector<8x8xf32>
    %cst = arith.constant dense<0.000000e+00> : vector<16x8xf32>
    %6 = tpu.matmul %2, %5, %cst {dimension_numbers = #tpu.dot_dimension_numbers<[1], [0], [0], [1], [0, 0, 1, 1], [], []>} : vector<16x8xf32>, vector<8x8xf32>, vector<16x8xf32> -> vector<16x8xf32>
    %cst_9 = arith.constant dense<0.000000e+00> : vector<16x16xf32>
    %7 = tpu.matmul %6, %3, %cst_9 {dimension_numbers = #tpu.dot_dimension_numbers<[1], [0], [0], [1], [0, 0, 1, 1], [], []>} : vector<16x8xf32>, vector<8x16xf32>, vector<16x16xf32> -> vector<16x16xf32>
    %cst_10 = arith.constant 1.280000e+02 : f32
    %8 = vector.broadcast %cst_10 : f32 to vector<16x16xf32>
    %9 = arith.subf %7, %8 : vector<16x16xf32>
    %c0_11 = arith.constant 0 : index
    %c0_12 = arith.constant 0 : index
    %c0_13 = arith.constant 0 : index
    %10 = vector.load %arg5[%c0_11, %c0_12, %c0_13] : memref<1x8x8xf32, #tpu.memory_space<vmem>>, vector<1x8x8xf32>
    %11 = vector.shape_cast %10 : vector<1x8x8xf32> to vector<8x8xf32>
    %cst_14 = arith.constant dense<0.000000e+00> : vector<16x8xf32>
    %12 = tpu.matmul %2, %11, %cst_14 {dimension_numbers = #tpu.dot_dimension_numbers<[1], [0], [0], [1], [0, 0, 1, 1], [], []>} : vector<16x8xf32>, vector<8x8xf32>, vector<16x8xf32> -> vector<16x8xf32>
    %cst_15 = arith.constant dense<0.000000e+00> : vector<16x16xf32>
    %13 = tpu.matmul %12, %3, %cst_15 {dimension_numbers = #tpu.dot_dimension_numbers<[1], [0], [0], [1], [0, 0, 1, 1], [], []>} : vector<16x8xf32>, vector<8x16xf32>, vector<16x16xf32> -> vector<16x16xf32>
    %cst_16 = arith.constant 1.280000e+02 : f32
    %14 = vector.broadcast %cst_16 : f32 to vector<16x16xf32>
    %15 = arith.subf %13, %14 : vector<16x16xf32>
    %cst_17 = arith.constant 1.402000e+00 : f32
    %16 = vector.broadcast %cst_17 : f32 to vector<16x16xf32>
    %17 = arith.mulf %16, %15 : vector<16x16xf32>
    %18 = arith.addf %1, %17 : vector<16x16xf32>
    %cst_18 = arith.constant 3.441360e-01 : f32
    %19 = vector.broadcast %cst_18 : f32 to vector<16x16xf32>
    %20 = arith.mulf %19, %9 : vector<16x16xf32>
    %21 = arith.subf %1, %20 : vector<16x16xf32>
    %cst_19 = arith.constant 7.141360e-01 : f32
    %22 = vector.broadcast %cst_19 : f32 to vector<16x16xf32>
    %23 = arith.mulf %22, %15 : vector<16x16xf32>
    %24 = arith.subf %21, %23 : vector<16x16xf32>
    %cst_20 = arith.constant 1.772000e+00 : f32
    %25 = vector.broadcast %cst_20 : f32 to vector<16x16xf32>
    %26 = arith.mulf %25, %9 : vector<16x16xf32>
    %27 = arith.addf %1, %26 : vector<16x16xf32>
    %cst_21 = arith.constant -577.870728 : f32
    %cst_22 = arith.constant 7.102740e+02 : f32
    %28 = vector.broadcast %cst_21 : f32 to vector<16x16xf32>
    %29 = arith.maximumf %28, %18 : vector<16x16xf32>
    %30 = vector.broadcast %cst_22 : f32 to vector<16x16xf32>
    %31 = arith.minimumf %30, %29 : vector<16x16xf32>
    %cst_23 = arith.constant 0.00392156886 : f32
    %32 = vector.broadcast %cst_23 : f32 to vector<16x16xf32>
    %33 = arith.mulf %31, %32 : vector<16x16xf32>
    %c0_24 = arith.constant 0 : index
    %c0_25 = arith.constant 0 : index
    %c0_26 = arith.constant 0 : index
    %c0_27 = arith.constant 0 : index
    %34 = vector.load %arg8[%c0_24, %c0_25, %c0_26, %c0_27] : memref<1x3x16x16xf32, #tpu.memory_space<vmem>>, vector<1x1x16x16xf32>
    %35 = vector.shape_cast %34 : vector<1x1x16x16xf32> to vector<16x16xf32>
    %36 = vector.shape_cast %33 : vector<16x16xf32> to vector<1x1x16x16xf32>
    tpu.vector_store %arg8[%c0_24, %c0_25, %c0_26, %c0_27], %36 {strides = array<i32>} : memref<1x3x16x16xf32, #tpu.memory_space<vmem>>, vector<1x1x16x16xf32>,
    %cst_28 = arith.constant -577.870728 : f32
    %cst_29 = arith.constant 7.102740e+02 : f32
    %37 = vector.broadcast %cst_28 : f32 to vector<16x16xf32>
    %38 = arith.maximumf %37, %24 : vector<16x16xf32>
    %39 = vector.broadcast %cst_29 : f32 to vector<16x16xf32>
    %40 = arith.minimumf %39, %38 : vector<16x16xf32>
    %cst_30 = arith.constant 0.00392156886 : f32
    %41 = vector.broadcast %cst_30 : f32 to vector<16x16xf32>
    %42 = arith.mulf %40, %41 : vector<16x16xf32>
    %c0_31 = arith.constant 0 : index
    %c1 = arith.constant 1 : index
    %c0_32 = arith.constant 0 : index
    %c0_33 = arith.constant 0 : index
    %43 = vector.load %arg8[%c0_31, %c1, %c0_32, %c0_33] : memref<1x3x16x16xf32, #tpu.memory_space<vmem>>, vector<1x1x16x16xf32>
    %44 = vector.shape_cast %43 : vector<1x1x16x16xf32> to vector<16x16xf32>
    %45 = vector.shape_cast %42 : vector<16x16xf32> to vector<1x1x16x16xf32>
    tpu.vector_store %arg8[%c0_31, %c1, %c0_32, %c0_33], %45 {strides = array<i32>} : memref<1x3x16x16xf32, #tpu.memory_space<vmem>>, vector<1x1x16x16xf32>,
    %cst_34 = arith.constant -577.870728 : f32
    %cst_35 = arith.constant 7.102740e+02 : f32
    %46 = vector.broadcast %cst_34 : f32 to vector<16x16xf32>
    %47 = arith.maximumf %46, %27 : vector<16x16xf32>
    %48 = vector.broadcast %cst_35 : f32 to vector<16x16xf32>
    %49 = arith.minimumf %48, %47 : vector<16x16xf32>
    %cst_36 = arith.constant 0.00392156886 : f32
    %50 = vector.broadcast %cst_36 : f32 to vector<16x16xf32>
    %51 = arith.mulf %49, %50 : vector<16x16xf32>
    %c0_37 = arith.constant 0 : index
    %c2 = arith.constant 2 : index
    %c0_38 = arith.constant 0 : index
    %c0_39 = arith.constant 0 : index
    %52 = vector.load %arg8[%c0_37, %c2, %c0_38, %c0_39] : memref<1x3x16x16xf32, #tpu.memory_space<vmem>>, vector<1x1x16x16xf32>
    %53 = vector.shape_cast %52 : vector<1x1x16x16xf32> to vector<16x16xf32>
    %54 = vector.shape_cast %51 : vector<16x16xf32> to vector<1x1x16x16xf32>
    tpu.vector_store %arg8[%c0_37, %c2, %c0_38, %c0_39], %54 {strides = array<i32>} : memref<1x3x16x16xf32, #tpu.memory_space<vmem>>, vector<1x1x16x16xf32>,
    return
  }
  func.func @transform_0(%arg0: i32, %arg1: i32, %arg2: i32) -> (i32, i32, i32) {
    %c0_i32 = arith.constant 0 : i32
    return %arg0, %arg1, %arg2 : i32, i32, i32
  }
  func.func @transform_1(%arg0: i32, %arg1: i32, %arg2: i32) -> (i32, i32, i32) {
    %c0_i32 = arith.constant 0 : i32
    return %arg0, %arg1, %arg2 : i32, i32, i32
  }
  func.func @transform_2(%arg0: i32, %arg1: i32, %arg2: i32) -> (i32, i32, i32) {
    %c0_i32 = arith.constant 0 : i32
    return %arg0, %arg1, %arg2 : i32, i32, i32
  }
  func.func @transform_3(%arg0: i32, %arg1: i32, %arg2: i32) -> (i32, i32) {
    %c0_i32 = arith.constant 0 : i32
    %c0_i32_0 = arith.constant 0 : i32
    %c0_i32_1 = arith.constant 0 : i32
    return %c0_i32, %c0_i32_0 : i32, i32
  }
  func.func @transform_4(%arg0: i32, %arg1: i32, %arg2: i32) -> (i32, i32) {
    %c0_i32 = arith.constant 0 : i32
    %c0_i32_0 = arith.constant 0 : i32
    %c0_i32_1 = arith.constant 0 : i32
    return %c0_i32, %c0_i32_0 : i32, i32
  }
  func.func @transform_5(%arg0: i32, %arg1: i32, %arg2: i32) -> (i32, i32, i32, i32) {
    %c0_i32 = arith.constant 0 : i32
    %c0_i32_0 = arith.constant 0 : i32
    return %arg0, %c0_i32, %arg1, %arg2 : i32, i32, i32, i32
  }
}

</mosaic_0001>

<bundles_post_ra>
// kernel: decompress_jpeg.4
= control target key start
LH: loop header
LB: loop body
LE: loop exit
PB: predicated region body
PF: predicated region fallthrough
CT: control target
= control target key end

     0   :  { %v369_v9 = vmov 1966171168   ;;  %v56_v11 = vlaneseq  ;;  %s487_s1 = inlined_call_operand.vmem [shape: bf16[256,256], index: 1, kind: input, shape index: {}]   ;;  %s488_s0 = inlined_call_operand.vmem [shape: bf16[2,256], index: 0, kind: input, shape index: {}]   ;;  %s489_s2 = inlined_call_operand.vmem [shape: f32[2,256], index: 2, kind: output, shape index: {}]  }
   0x1   :  { %v321_v0 = vld [vmem:[%s487_s1 + $0x4] ss:$8 sps:$4 sm:$0xff]   ;;  %v323_v1 = vld [vmem:[%s487_s1] ss:$8 sps:$4 sm:$0xff]   ;;  %v324_v2 = vld [vmem:[%s487_s1 + $0x14] ss:$8 sps:$4 sm:$0xff]   ;;  %v54_v10 = vunpack.c.l.s4 %v369_v9 }
   0x2   :  { %229 = vmatprep.subr.bf16.mxu0 %v321_v0  ;;  %v326_v3 = vld [vmem:[%s487_s1 + $0x10] ss:$8 sps:$4 sm:$0xff]   ;;  %v327_v4 = vld [vmem:[%s487_s1 + $0x24] ss:$8 sps:$4 sm:$0xff]   ;;  %v329_v5 = vld [vmem:[%s487_s1 + $0x20] ss:$8 sps:$4 sm:$0xff]  }
   0x3   :  { %230 = vmatpush1.bf16.msra.mxu0 %v323_v1  ;;  %v330_v6 = vld [vmem:[%s487_s1 + $0x34] ss:$8 sps:$4 sm:$0xff]   ;;  %v332_v7 = vld [vmem:[%s487_s1 + $0x30] ss:$8 sps:$4 sm:$0xff]   ;;  %v333_v8 = vld [vmem:[%s487_s1 + $0x44] ss:$8 sps:$4 sm:$0xff]   ;;  %v55_v14 = vunpack.c.0.s8 %v54_v10 }
   0x4   :  { %231 = vmatprep.subr.bf16.mxu0 %v324_v2  ;;  %v335_v12 = vld [vmem:[%s487_s1 + $0x40] ss:$8 sps:$4 sm:$0xff]   ;;  %v336_v13 = vld [vmem:[%s487_s1 + $0x54] ss:$8 sps:$4 sm:$0xff]   ;;  %v57_v15 = vshrl.u32 %v56_v11, 7 }
   0x5   :  { %v338_v16 = vld [vmem:[%s487_s1 + $0x50] ss:$8 sps:$4 sm:$0xff]   ;;  %v339_v17 = vld [vmem:[%s487_s1 + $0x64] ss:$8 sps:$4 sm:$0xff]   ;;  %v341_v21 = vld [vmem:[%s487_s1 + $0x60] ss:$8 sps:$4 sm:$0xff]  }
   0x6   :  { %v58_v18 = vsub.s32 %v55_v14, %v57_v15  ;;  %v286_v19 = vld.sshfl [vmem:[%s488_s0] sm:$0x11 pattern:$0x75316420]  ;;  %v342_v22 = vld [vmem:[%s487_s1 + $0x74] ss:$8 sps:$4 sm:$0xff]  }
   0x7   :  { %232 = vmatpush1.bf16.msra.mxu0 %v326_v3  ;;  %v52_v20 = vcombine.high %v286_v19, %v286_v19  ;;  %v344_v24 = vld [vmem:[%s487_s1 + $0x70] ss:$8 sps:$4 sm:$0xff]   ;;  %v345_v25 = vld [vmem:[%s487_s1 + $0x84] ss:$8 sps:$4 sm:$0xff]   ;;  %v347_v26 = vld [vmem:[%s487_s1 + $0x80] ss:$8 sps:$4 sm:$0xff]  }
   0x8   :  { %233 = vmatprep.subr.bf16.mxu0 %v327_v4  ;;  %v348_v27 = vld [vmem:[%s487_s1 + $0x94] ss:$8 sps:$4 sm:$0xff]   ;;  %v350_v28 = vld [vmem:[%s487_s1 + $0x90] ss:$8 sps:$4 sm:$0xff]   ;;  %v351_v29 = vld [vmem:[%s487_s1 + $0xa4] ss:$8 sps:$4 sm:$0xff]   ;;  %v59_v41 = vrot.slane %v286_v19, %v58_v18 }
   0x9   :  { %v66_v23 = vrot.slane %v52_v20, %v58_v18  ;;  %v353_v30 = vld [vmem:[%s487_s1 + $0xa0] ss:$8 sps:$4 sm:$0xff]   ;;  %v354_v31 = vld [vmem:[%s487_s1 + $0xb4] ss:$8 sps:$4 sm:$0xff]   ;;  %v356_v32 = vld [vmem:[%s487_s1 + $0xb0] ss:$8 sps:$4 sm:$0xff]  }
   0xa   :  { %v357_v33 = vld [vmem:[%s487_s1 + $0xc4] ss:$8 sps:$4 sm:$0xff]   ;;  %v359_v34 = vld [vmem:[%s487_s1 + $0xc0] ss:$8 sps:$4 sm:$0xff]   ;;  %v360_v35 = vld [vmem:[%s487_s1 + $0xd4] ss:$8 sps:$4 sm:$0xff]  }
   0xb   :  { %234 = vmatpush1.bf16.msra.mxu0 %v329_v5  ;;  %261 = vmatprep.mubr.bf16.mxu0 %v66_v23  ;;  %v362_v36 = vld [vmem:[%s487_s1 + $0xd0] ss:$8 sps:$4 sm:$0xff]   ;;  %v363_v37 = vld [vmem:[%s487_s1 + $0xe4] ss:$8 sps:$4 sm:$0xff]   ;;  %v365_v38 = vld [vmem:[%s487_s1 + $0xe0] ss:$8 sps:$4 sm:$0xff]  }
   0xc   :  { %235 = vmatprep.subr.bf16.mxu0 %v330_v6  ;;  %v366_v39 = vld [vmem:[%s487_s1 + $0xf4] ss:$8 sps:$4 sm:$0xff]   ;;  %v368_v40 = vld [vmem:[%s487_s1 + $0xf0] ss:$8 sps:$4 sm:$0xff]  }
   0xf   :  { %236 = vmatpush1.bf16.msra.mxu0 %v332_v7 }
  0x10   :  { %237 = vmatprep.subr.bf16.mxu0 %v333_v8 }
  0x13   :  { %238 = vmatpush1.bf16.msra.mxu0 %v335_v12 }
  0x14   :  { %239 = vmatprep.subr.bf16.mxu0 %v336_v13 }
  0x17   :  { %240 = vmatpush1.bf16.msra.mxu0 %v338_v16 }
  0x18   :  { %241 = vmatprep.subr.bf16.mxu0 %v339_v17 }
  0x1b   :  { %242 = vmatpush1.bf16.msra.mxu0 %v341_v21 }
  0x1c   :  { %243 = vmatprep.subr.bf16.mxu0 %v342_v22 }
  0x1f   :  { %244 = vmatpush1.bf16.msra.mxu0 %v344_v24 }
  0x20   :  { %245 = vmatprep.subr.bf16.mxu0 %v345_v25 }
  0x23   :  { %246 = vmatpush1.bf16.msra.mxu0 %v347_v26 }
  0x24   :  { %247 = vmatprep.subr.bf16.mxu0 %v348_v27 }
  0x27   :  { %248 = vmatpush1.bf16.msra.mxu0 %v350_v28 }
  0x28   :  { %249 = vmatprep.subr.bf16.mxu0 %v351_v29 }
  0x2b   :  { %250 = vmatpush1.bf16.msra.mxu0 %v353_v30 }
  0x2c   :  { %251 = vmatprep.subr.bf16.mxu0 %v354_v31 }
  0x2f   :  { %252 = vmatpush1.bf16.msra.mxu0 %v356_v32 }
  0x30   :  { %253 = vmatprep.subr.bf16.mxu0 %v357_v33 }
  0x33   :  { %254 = vmatpush1.bf16.msra.mxu0 %v359_v34 }
  0x34   :  { %255 = vmatprep.subr.bf16.mxu0 %v360_v35 }
  0x37   :  { %256 = vmatpush1.bf16.msra.mxu0 %v362_v36 }
  0x38   :  { %257 = vmatprep.subr.bf16.mxu0 %v363_v37 }
  0x3b   :  { %258 = vmatpush1.bf16.msra.mxu0 %v365_v38 }
  0x3c   :  { %259 = vmatprep.subr.bf16.mxu0 %v366_v39 }
  0x3f   :  { %260 = vmatpush1.bf16.msra.mxu0 %v368_v40 }
  0x42   :  { %262 = vmatmul.mubr.bf16.vlgmr.msra.gmra.mrb[0].mxu0 %v59_v41 }
 0x115   :  { %v263_v42 = vpop.f32.mrb[0].mxu0 }
 0x116   :  { %v264_v43 = vadd.f32 128.0, %v263_v42  ;;  %v265_v44 = vpop.f32.mrb[1].mxu0 }
 0x117   :  { %v266_v45 = vadd.f32 128.0, %v265_v44  ;;  %v267_v46 = vpop.f32.mrb[2].mxu0 }
 0x118   :  { %v268_v47 = vpop.f32.mrb[3].mxu0 }
 0x119   :  { %v272_v48 = vcombine.low %v264_v43, %v266_v45 }
 0x11b   :  { %319 = vst.sshfl [vmem:[%s489_s2] sm:$0x33 pattern:$0x76325410] %v272_v48 }

// kernel: decompress_jpeg.5
= control target key start
LH: loop header
LB: loop body
LE: loop exit
PB: predicated region body
PF: predicated region fallthrough
CT: control target
= control target key end

     0   :  { %v169_v0 = vmov 0.0   ;;  %vm170_vm0 = vmmov 0   ;;  %s216_s1 = inlined_call_operand.vmem [shape: bf16[128,128], index: 1, kind: input, shape index: {}]   ;;  %s217_s0 = inlined_call_operand.vmem [shape: bf16[1,128], index: 0, kind: input, shape index: {}]   ;;  %s218_s2 = inlined_call_operand.vmem [shape: f32[1,128], index: 2, kind: output, shape index: {}]  }
   0x1   :  { %139 = vmatprep.subr.bf16.mxu0 %v169_v0  ;;  %v161_v1 = vld [vmem:[%s216_s1] sm:$0xff]   ;;  %155 = vmatprep.mubr.msk.bf16.mxu0 %vm170_vm0, %v169_v0  ;;  %v162_v2 = vld [vmem:[%s216_s1 + $0x8] sm:$0xff]   ;;  %v163_v3 = vld [vmem:[%s216_s1 + $0x10] sm:$0xff]  }
   0x2   :  { %140 = vmatpush3.bf16.msra.mxu0 %v161_v1  ;;  %v164_v4 = vld [vmem:[%s216_s1 + $0x18] sm:$0xff]   ;;  %v165_v5 = vld [vmem:[%s216_s1 + $0x20] sm:$0xff]   ;;  %v166_v6 = vld [vmem:[%s216_s1 + $0x28] sm:$0xff]  }
   0x3   :  { %141 = vmatprep.subr.bf16.mxu0 %v169_v0  ;;  %v167_v7 = vld [vmem:[%s216_s1 + $0x30] sm:$0xff]   ;;  %v168_v8 = vld [vmem:[%s216_s1 + $0x38] sm:$0xff]   ;;  %v12_v9 = vld [vmem:[%s217_s0] sm:$0x1] }
   0x6   :  { %142 = vmatpush3.bf16.msra.mxu0 %v162_v2 }
   0x7   :  { %143 = vmatprep.subr.bf16.mxu0 %v169_v0 }
   0xa   :  { %144 = vmatpush3.bf16.msra.mxu0 %v163_v3 }
   0xb   :  { %145 = vmatprep.subr.bf16.mxu0 %v169_v0 }
   0xe   :  { %146 = vmatpush3.bf16.msra.mxu0 %v164_v4 }
   0xf   :  { %147 = vmatprep.subr.bf16.mxu0 %v169_v0 }
  0x12   :  { %148 = vmatpush3.bf16.msra.mxu0 %v165_v5 }
  0x13   :  { %149 = vmatprep.subr.bf16.mxu0 %v169_v0 }
  0x16   :  { %150 = vmatpush3.bf16.msra.mxu0 %v166_v6 }
  0x17   :  { %151 = vmatprep.subr.bf16.mxu0 %v169_v0 }
  0x1a   :  { %152 = vmatpush3.bf16.msra.mxu0 %v167_v7 }
  0x1b   :  { %153 = vmatprep.subr.bf16.mxu0 %v169_v0 }
  0x1e   :  { %154 = vmatpush3.bf16.msra.mxu0 %v168_v8 }
  0x21   :  { %156 = vmatmul.mubr.bf16.vlgmr.msra.gmra.mrb[0].mxu0 %v12_v9 }
  0xf4   :  { %v111_v10 = vpop.f32.mrb[0].mxu0 }
  0xf5   :  { %v112_v11 = vadd.f32 128.0, %v111_v10  ;;  %v157_v12 = vpop.f32.mrb[1].mxu0 }
  0xf6   :  { %v114_v13 = vpop.f32.mrb[2].mxu0 }
  0xf7   :  { %117 = vst [vmem:[%s218_s2] sm:$0x1] %v112_v11  ;;  %v158_v14 = vpop.f32.mrb[3].mxu0 }

// kernel: decompress_jpeg.7
= control target key start
LH: loop header
LB: loop body
LE: loop exit
PB: predicated region body
PF: predicated region fallthrough
CT: control target
= control target key end

     0   :  { %10 = vsyncpa [#allocation3], 0  ;;  %s1249_s0 = inlined_call_operand.vmem [shape: f32[2,16,16], index: 0, kind: input, shape index: {}]   ;;  %s1250_s1 = inlined_call_operand.vmem [shape: f32[2,8,8], index: 1, kind: input, shape index: {}]   ;;  %s1251_s2 = inlined_call_operand.vmem [shape: f32[2,8,8], index: 2, kind: input, shape index: {}]   ;;  %s1252_s3 = inlined_call_operand.vmem [shape: f32[16,8], index: 3, kind: input, shape index: {}]   ;;  %s1253_s4 = inlined_call_operand.vmem [shape: f32[8,16], index: 4, kind: input, shape index: {}]   ;;  %s1254_s5 = inlined_call_operand.hbm [shape: f32[2,3,16,16], index: 5, kind: output, shape index: {}]  }
   0x1   :  { %12 = vsyncpa [#allocation3 + $0x1], 0  ;;  %s1097_s18 = smov 0   ;;  %s1099_s19 = smov 0  }
   0x2   :  { %s1101_s20 = smov 0   ;;  %s1103_s21 = smov 0  }
   0x3   :  { %s1105_s22 = smov 0   ;;  %s1107_s23 = smov 0  }
   0x4 LB: > { %s864_s24 = sadd.s32 4294967295, %s1062_s23   ;;  %s865_s25 = sadd.s32 4294967294, %s1062_s23   ;;  %s1062_s23 = sphi %s1107_s23, %s18_s23   ;;  %s1058_s22 = sphi %s1105_s22, %s1261_s22   ;;  %s1054_s21 = sphi %s1103_s21, %s1260_s21   ;;  %s1050_s20 = sphi %s1101_s20, %s1259_s20   ;;  %s1046_s19 = sphi %s1099_s19, %s1258_s19   ;;  %s1042_s18 = sphi %s1097_s18, %s1257_s18  }
   0x5   : > { %s37_s26 = sadd.s32 1, %s1058_s22  ;;  %s180_s27 = sadd.s32 1, %s1050_s20 }
   0x6   : > { %p39_p0 = scmp.ge.s32.totalorder %s37_s26, 2  ;;  %p190_p1 = scmp.ne.s32.totalorder %s1050_s20, %s1046_s19 }
   0x7   : > { %p191_p2 = scmp.eq.s32.totalorder %s864_s24, 1  ;;  %p196_p3 = scmp.ne.s32.totalorder %s1046_s19, %s1042_s18 }
   0x8   : > { %s1263_s26 = smov (%p39_p0, %s37_s26), 0  ;;  %p197_p5 = scmp.eq.s32.totalorder %s865_s25, 1 }
   0x9   : > { %p1137_p4 = por %p191_p2, %p190_p1  ;;  %s173_s29 = ssub.s32 %s1058_s22, %s1263_s26 }
   0xa   : > { %p868_p6 = scmp.ge.s32.totalorder %s1062_s23, 1  ;;  %p178_p7 = scmp.eq.s32.totalorder %s173_s29, 0 }
   0xb   : > { %p1144_p8 = por %p197_p5, %p196_p3  ;;  %p263_p9 = scmp.lt.s32.totalorder %s1062_s23, 3 }
   0xc   : > { %s1150_s6 = scalar_select %p178_p7, %s1050_s20, %s180_s27  }
   0xd   : > { %p264_p10 = pnand %p868_p6, %p263_p9 }
   0xe   : > { %p319_p11 = scmp.lt.s32.totalorder (!%p264_p10), %s1054_s21, 1  ;;  %v354_v0 = vld [vmem:[%s1252_s3] sm:$0xff] (!%p264_p10)  ;;  %vm358_vm0 = vcmask (!%p264_p10), 64512   ;;  %v355_v2 = vld [vmem:[%s1252_s3 + $0x8] sm:$0xff] (!%p264_p10)  ;;  %s315_s11 = sand.u32 (!%p264_p10), 1, %s1046_s19   ;;  %vm704_vm1 = vcmask (!%p264_p10), 130048  }
   0xf   : > { %267 = sbr.rel (%p264_p10) target bundleno = 487 (0x1e7), region = 40  ;;  %907 = vmatprep.mubr.msk.f32.mxu0 (!%p264_p10), %vm358_vm0, %v354_v0  ;;  %v356_v4 = vld [vmem:[%s1253_s4] sm:$0xff] (!%p264_p10)  ;;  %s1203_s17 = scalar_lea.sflag (!%p264_p10), [#allocation3], %s315_s11 }
  0x10   : > { %910 = vmatprep.subr.mxu1 (!%p264_p10), %v356_v4  ;;  %s925_s12 = smul.u32 (!%p264_p10), 48, %s315_s11  ;;  %s1064_s25 = smov (!%p264_p10), [#allocation2]  }
  0x11   : > { %911 = vmatpush3.msra.mxu1 (!%p264_p10), %v356_v4  ;;  %s988_s27 = sshll.u32 (!%p264_p10), %s1064_s25, 4  ;;  %s989_s27 = int_to_ptr.vmem [resolvable:$false] %s988_s27 }
  0x12   : > { %920 = vmatprep.subr.mxu1 (!%p264_p10), %v356_v4 }
  0x16   : > { %s1158_s9 = scalar_select %p319_p11, %s1054_s21, 1 }
  0x18   : > { %s871_s10 = sshll.u32 %s1158_s9, 3  ;;  %s892_s29 = sshll.u32 %s1158_s9, 4 }
  0x19   : > { %s340_s13 = scalar_lea.vmem %s1250_s1, %s871_s10  ;;  %s350_s24 = scalar_lea.vmem %s1251_s2, %s871_s10 }
  0x1a   : > { %v357_v1 = vld [vmem:[%s340_s13] sm:$0xff]  ;;  %s329_s10 = scalar_lea.vmem %s1249_s0, %s892_s29  ;;  %s926_s9 = smul.u32 768, %s1054_s21 }
  0x1b   : > { %905 = vmatprep.subr.mxu0 %v357_v1  ;;  %v523_v3 = vld [vmem:[%s350_s24] sm:$0xff]  ;;  %v353_v12 = vld [vmem:[%s329_s10 + $0x8] sm:$0xff]  ;;  %s317_s13 = scalar_lea.vmem [#allocation2], %s925_s12  ;;  %s990_s29 = scalar_lea.vmem %s989_s27, 1536 }
  0x1c   : > { %906 = vmatpush3.msra.mxu0 %v357_v1  ;;  %v352_v16 = vld [vmem:[%s329_s10] sm:$0xff]  ;;  %s742_s14 = sshll.u32 %s317_s13, 4  ;;  %s1193_s16 = scalar_lea.hbm %s1254_s5, %s926_s9  ;;  %s1195_s14 = int_to_ptr.vmem [resolvable:$true] %s742_s14 }
  0x1d   : > { %908 = vmatmul.mubr.msk.f32.vlgmr.msra.gmra.mrb[0].mxu0 %vm358_vm0, %v355_v2  ;;  %915 = vmatprep.subr.mxu0 %v523_v3  ;;  %s984_s24 = scalar_lea.vmem %s1195_s14, 768  ;;  %p991_p1 = scmp.lt.s32.totalorder %s1195_s14, %s989_s27 }
  0x1e   : > { %916 = vmatpush3.msra.mxu0 %v523_v3  ;;  %917 = vmatprep.mubr.msk.f32.mxu0 %vm358_vm0, %v354_v0  ;;  %p985_p12 = scmp.ne.s32.totalorder %s1195_s14, %s984_s24  ;;  %p992_p2 = scmp.lt.s32.totalorder %s990_s29, %s984_s24 }
  0x20   : > { %p986_p13 = pnand %p985_p12, %p1137_p4  ;;  %p993_p3 = por %p992_p2, %p991_p1 }
  0x21   : > { %918 = vmatmul.mubr.msk.f32.vlgmr.msra.gmra.mrb[2].mxu0 %vm358_vm0, %v355_v2 }
  0x22   : > { %p987_p0 = pneg %p986_p13 }
  0x24   : > { %p994_p5 = pnand %p993_p3, %p987_p0 }
  0xf0   : > { %v909_v5 = vpop.f32.mrb[0].mxu0 }
  0xf1   : > { %v431_v6 = vpop.f32.mrb[1].mxu0 }
  0xf2   : > { %912 = vmatprep.mubr.msk.f32.mxu1 %vm358_vm0, %v431_v6 }
  0xf3   : > { %913 = vmatmul.mubr.msk.f32.vlgmr.msra.gmra.mrb[0].mxu1 %vm358_vm0, %v909_v5 }
  0xf4   : > { %v919_v7 = vpop.f32.mrb[2].mxu0  ;;  %921 = vmatpush3.msra.mxu1 %v356_v4 }
  0xf5   : > { %v590_v8 = vpop.f32.mrb[3].mxu0 }
  0xf6   : > { %922 = vmatprep.mubr.msk.f32.mxu1 %vm358_vm0, %v590_v8 }
  0xf7   : > { %923 = vmatmul.mubr.msk.f32.vlgmr.msra.gmra.mrb[2].mxu1 %vm358_vm0, %v919_v7 }
 0x1c6   : > { %v914_v9 = vpop.f32.mrb[0].mxu1 }
 0x1c7   : > { %v878_v10 = vadd.f32 -128.0, %v914_v9  ;;  %v512_v11 = vpop.f32.mrb[1].mxu1 }
 0x1c8   : > { %v877_v13 = vadd.f32 -128.0, %v512_v11 }
 0x1c9   : > { %v687_v14 = vmul.f32 0.344136, %v878_v10  ;;  %v695_v15 = vmul.f32 1.772, %v878_v10 }
 0x1ca   : > { %v686_v17 = vmul.f32 0.344136, %v877_v13  ;;  %v694_v18 = vmul.f32 1.772, %v877_v13  ;;  %v924_v19 = vpop.f32.mrb[2].mxu1 }
 0x1cb   : > { %v689_v20 = vsub.f32 %v353_v12, %v687_v14  ;;  %v697_v21 = vadd.f32 %v695_v15, %v353_v12  ;;  %v884_v22 = vadd.f32 -128.0, %v924_v19  ;;  %v671_v23 = vpop.f32.mrb[3].mxu1 }
 0x1cc   : > { %v688_v24 = vsub.f32 %v352_v16, %v686_v17  ;;  %v696_v25 = vadd.f32 %v694_v18, %v352_v16  ;;  %v883_v26 = vadd.f32 -128.0, %v671_v23 }
 0x1cd   : > { %v717_v27 = vmax.f32 %v697_v21, -577.8707  ;;  %v683_v28 = vmul.f32 1.402, %v884_v22  ;;  %v691_v29 = vmul.f32 0.714136, %v884_v22 }
 0x1ce   : > { %v716_v30 = vmax.f32 %v696_v25, -577.8707  ;;  %v682_v31 = vmul.f32 1.402, %v883_v26  ;;  %v690_v32 = vmul.f32 0.714136, %v883_v26 }
 0x1cf   : > { %v719_v33 = vmin.f32 %v717_v27, 710.274  ;;  %v685_v34 = vadd.f32 %v683_v28, %v353_v12  ;;  %v693_v35 = vsub.f32 %v689_v20, %v691_v29 }
 0x1d0   : > { %v718_v36 = vmin.f32 %v716_v30, 710.274  ;;  %v684_v37 = vadd.f32 %v682_v31, %v352_v16  ;;  %v692_v38 = vsub.f32 %v688_v24, %v690_v32 }
 0x1d1   : > { %v721_v39 = vmul.f32 0.003921569, %v719_v33  ;;  %v699_v40 = vmax.f32 %v685_v34, -577.8707  ;;  %v708_v41 = vmax.f32 %v693_v35, -577.8707 }
 0x1d2   : > { %v720_v42 = vmul.f32 0.003921569, %v718_v36  ;;  %v698_v43 = vmax.f32 %v684_v37, -577.8707  ;;  %v707_v44 = vmax.f32 %v692_v38, -577.8707 }
 0x1d3   : > { %888 = vst.msk [vmem:[%s317_s13 + $0x28] sm:$0xff] %vm704_vm1, %v721_v39  ;;  %v701_v45 = vmin.f32 %v699_v40, 710.274  ;;  %v710_v46 = vmin.f32 %v708_v41, 710.274 }
 0x1d4   : > { %887 = vst.msk [vmem:[%s317_s13 + $0x20] sm:$0xff] %vm704_vm1, %v720_v42  ;;  %v700_v47 = vmin.f32 %v698_v43, 710.274  ;;  %v709_v48 = vmin.f32 %v707_v44, 710.274 }
 0x1d5   : > { %v703_v49 = vmul.f32 0.003921569, %v701_v45  ;;  %v712_v50 = vmul.f32 0.003921569, %v710_v46 }
 0x1d6   : > { %v702_v51 = vmul.f32 0.003921569, %v700_v47  ;;  %v711_v52 = vmul.f32 0.003921569, %v709_v48 }
 0x1d7   : > { %706 = vst.msk [vmem:[%s317_s13 + $0x8] sm:$0xff] %vm704_vm1, %v703_v49  ;;  %886 = vst.msk [vmem:[%s317_s13 + $0x18] sm:$0xff] %vm704_vm1, %v712_v50 }
 0x1d8   : > { %705 = vst.msk [vmem:[%s317_s13] sm:$0xff] %vm704_vm1, %v702_v51  ;;  %885 = vst.msk [vmem:[%s317_s13 + $0x10] sm:$0xff] %vm704_vm1, %v711_v52 }
 0x1d9   : > { %997 = shalt.err (!%p994_p5)
}
 0x1da   : > { %s998_s7 = scalar_lea.hbm %s1193_s16, 768  ;;  %s1002_s11 = scalar_lea.hbm %s1254_s5, 1536 }
 0x1db   : > { %p999_p6 = scmp.ne.s32.totalorder %s1193_s16, %s998_s7  ;;  %p1003_p10 = scmp.lt.u32.totalorder %s1193_s16, %s1254_s5 }
 0x1dc   : > { %p1004_p11 = scmp.lt.u32.totalorder %s1002_s11, %s998_s7  ;;  %p1006_p13 = scmp.lt.u32.totalorder %s998_s7, %s1193_s16 }
 0x1dd   : > { %p1000_p7 = pnand %p999_p6, %p1137_p4 }
 0x1de   : > { %p1005_p12 = por %p1004_p11, %p1003_p10 }
 0x1df   : > { %p1001_p9 = pneg %p1000_p7 }
 0x1e0   : > { %p1007_p0 = por %p1006_p13, %p1005_p12 }
 0x1e2   : > { %p1008_p1 = pnand %p1007_p0, %p1001_p9 }
 0x1e4   : > { %1011 = shalt.err (!%p1008_p1)
}
 0x1e5   : > { %s1065_s13 = smov 128   ;;  %s1066_s21 = smov 8  }
 0x1e6   : > { %927 = dma.vmem_to_hbm [thread:$0]  (%p1137_p4), %s1195_s14, 768, %s1193_s16, %s1203_s17, %s1065_s13, %s1065_s13, %s1066_s21  }
 0x1e7 PF: > { %p933_p2 = scmp.ge.s32.totalorder %s1062_s23, 2  ;;  %s757_s15 = sand.u32 1, %s1042_s18  }
 0x1e8   : > { %s758_s24 = scalar_lea.sflag [#allocation3], %s757_s15 }
 0x1e9   : > { %p930_p3 = pnand %p933_p2, %p1144_p8 }
 0x1eb   : > { %1037 = dma.done.wait (!%p930_p3), %s758_s24, 768  }
 0x1ec   : > { %1039 = vsyncadd (!%p930_p3), %s758_s24, 4294966528  ;;  %s18_s23 = sadd.s32 1, %s1062_s23   ;;  %s1257_s18 = smov %s1046_s19 }
 0x1ed   : > { %p15_p5 = scmp.ge.s32.totalorder %s18_s23, 4   ;;  %s1258_s19 = smov %s1050_s20 }
 0x1ee   : > { %s1259_s20 = smov %s1150_s6  ;;  %s1260_s21 = smov %s1058_s22 }
 0x1ef   : > { %s1261_s22 = smov %s1263_s26  ;;  %17 = sbr.rel (!%p15_p5) target bundleno = 4 (0x4), region = 83 }
 0x1f6   :  { %763 = vsyncpa [#allocation3], 1 }
 0x1f7   :  { %765 = vsyncpa [#allocation3 + $0x1], 1 }

</bundles_post_ra>
